<compile_context>
chip_gen: v7x
topology: tpu7x:2x2x1
jax: 0.10.0
libtpu: 0.0.40
codegen_flags: <defaults>
</compile_context>

<pallas_src>
import functools

import jax
import jax.numpy as jnp
from jax.experimental import pallas as pl
from jax.experimental.pallas import tpu as pltpu

_LANE = 128
_MIN_GRID_STEPS = 4  # keep a few steps so v7x megacore can shard the grid


def _residual_add_kernel(fx_ref, x_ref, o_ref):
    # elementwise VPU add of the fn(x) tile and the residual x tile
    o_ref[...] = fx_ref[...] + x_ref[...]


def _sublane_multiple(itemsize):
    # sub-32-bit dtypes pack along sublanes
    return {4: 8, 2: 16, 1: 32}.get(itemsize, 8)


@functools.lru_cache(maxsize=None)
def _vmem_tuning():
    """Return (per-buffer block bytes, vmem_limit_bytes), generation-aware."""
    try:
        vmem_cap = int(pltpu.get_tpu_info().vmem_capacity_bytes)
    except Exception:
        vmem_cap = 64 * 1024 * 1024  # conservative (v7x-sized) fallback
    if vmem_cap >= 96 * 1024 * 1024:
        # v5e / v6e: 128 MiB physical VMEM. 8 MiB blocks -> 48 MiB footprint.
        return 8 * 1024 * 1024, 64 * 1024 * 1024
    # v7x: 64 MiB per TC. 4 MiB blocks -> 24 MiB footprint, plenty of headroom.
    return 4 * 1024 * 1024, 40 * 1024 * 1024


def _residual_add_2d(fx2, x2):
    """Pallas streaming add on an already lane-dense (rows, lane_w) slab."""
    rows, lane_w = fx2.shape
    dtype = fx2.dtype
    itemsize = dtype.itemsize
    sub = _sublane_multiple(itemsize)
    block_bytes, vmem_limit = _vmem_tuning()

    # Multi-MiB, dtype-aware sublane block height.
    tm = max(sub, (block_bytes // (lane_w * itemsize)) // sub * sub)
    # Keep >= _MIN_GRID_STEPS grid steps when the tensor allows it, so the
    # "parallel" grid axis actually gives both v7x TensorCores work.
    if rows >= _MIN_GRID_STEPS * sub:
        tm = min(tm, max(sub, (rows // _MIN_GRID_STEPS) // sub * sub))
    tm = min(tm, rows)  # tm is a multiple of `sub`, or equals the full dim
    grid = (pl.cdiv(rows, tm),)  # Pallas masks any ragged boundary block

    return pl.pallas_call(
        _residual_add_kernel,
        out_shape=jax.ShapeDtypeStruct((rows, lane_w), dtype),
        grid_spec=pl.GridSpec(
            grid=grid,
            in_specs=[
                pl.BlockSpec((tm, lane_w), lambda i: (i, 0)),
                pl.BlockSpec((tm, lane_w), lambda i: (i, 0)),
            ],
            out_specs=pl.BlockSpec((tm, lane_w), lambda i: (i, 0)),
        ),
        compiler_params=pltpu.CompilerParams(
            dimension_semantics=("parallel",),
            vmem_limit_bytes=vmem_limit,
        ),
        # fn(x) is a temporary consumed only here: reuse its HBM buffer.
        input_output_aliases={0: 0},
        cost_estimate=pl.CostEstimate(
            flops=rows * lane_w,
            transcendentals=0,
            bytes_accessed=3 * rows * lane_w * itemsize,
        ),
    )(fx2, x2)


def residual_add(fx, x):
    """Pallas TPU kernel computing fx + x (the Residual hot path)."""
    assert fx.shape == x.shape, (fx.shape, x.shape)
    assert fx.dtype == x.dtype, (fx.dtype, x.dtype)
    orig_shape = x.shape
    total = int(x.size)
    if total == 0:
        return x

    # Widest lane width (multiple of 128, up to 1024) dividing the flat size.
    # rows need not be a multiple of the sublane pack: only the block height
    # must be, and Pallas masks the ragged last block.
    lane_w = None
    for cand in (8 * _LANE, 4 * _LANE, 2 * _LANE, _LANE):
        if total % cand == 0:
            lane_w = cand
            break

    if lane_w is not None:
        out2 = _residual_add_2d(fx.reshape(-1, lane_w), x.reshape(-1, lane_w))
        return out2.reshape(orig_shape)

    # Ragged flat size: run the kernel on the lane-aligned bulk and add the
    # (<128 element) tail in plain JAX -- avoids the jnp.pad HBM round trip.
    lane_w = _LANE
    bulk = (total // lane_w) * lane_w
    fx_flat = fx.reshape(-1)
    x_flat = x.reshape(-1)
    if bulk == 0:  # tiny tensor: a kernel launch would be pure overhead
        return (fx_flat + x_flat).reshape(orig_shape)
    bulk_out = _residual_add_2d(
        fx_flat[:bulk].reshape(-1, lane_w), x_flat[:bulk].reshape(-1, lane_w)
    ).reshape(-1)
    tail_out = fx_flat[bulk:] + x_flat[bulk:]
    return jnp.concatenate([bulk_out, tail_out]).reshape(orig_shape)


# fn(x) is a one-use temporary: donating it lets input_output_aliases truly
# reuse its HBM buffer for the output (no defensive copy), and jit keeps the
# reshape glue as bitcasts instead of separate dispatches.
_residual_add_jit = jax.jit(residual_add, donate_argnums=(0,))


class Residual:
    """JAX/Pallas equivalent of the PyTorch Residual module."""

    def __init__(self, fn):
        self.fn = fn

    def __call__(self, x, *args, **kwargs):
        return _residual_add_jit(self.fn(x, *args, **kwargs), x)


def make_pointwise_conv(key, channels, dtype=jnp.float32):
    """Deterministic 1x1 conv (NCHW) used as the demo `fn`."""
    wkey, bkey = jax.random.split(key)
    w = jax.random.normal(wkey, (channels, channels), dtype) * 0.1  # (C_out, C_in)
    b = jax.random.normal(bkey, (channels,), dtype) * 0.1

    def fn(x):  # x: (N, C, H, W)
        y = jnp.einsum("oc,nchw->nohw", w, x)
        return y + b[None, :, None, None]

    return fn


if __name__ == "__main__":
    key = jax.random.PRNGKey(0)
    xkey, fkey = jax.random.split(key)

    N, C, H, W = 2, 4, 16, 16
    x = jax.random.normal(xkey, (N, C, H, W), jnp.float32)

    fn = make_pointwise_conv(fkey, C)
    residual = Residual(fn)

    out = jax.block_until_ready(residual(x))

    # Reference (pure JAX) check of forward semantics: fn(x) + x
    ref = fn(x) + x
    assert out.shape == x.shape
    assert out.dtype == x.dtype
    assert jnp.allclose(out, ref, atol=1e-5, rtol=1e-5), "mismatch vs reference"

    print("KERNEL_OK")
</pallas_src>

<mosaic_0001>
module attributes {stable_mosaic.version = 11 : i64} {
  func.func @_residual_add_kernel(%arg0: i32, %arg1: memref<2x1024xf32, #tpu.memory_space<vmem>>, %arg2: memref<2x1024xf32, #tpu.memory_space<vmem>>, %arg3: memref<2x1024xf32, #tpu.memory_space<vmem>>) attributes {dimension_semantics = [#tpu.dimension_semantics<parallel>], iteration_bounds = array<i64: 1>, scalar_prefetch = 0 : i64, scratch_operands = 0 : i64, tpu.core_type = #tpu.core_type<tc>, window_params = [{transform_indices = @transform_0, window_bounds = array<i64: 2, 1024>}, {transform_indices = @transform_1, window_bounds = array<i64: 2, 1024>}, {transform_indices = @transform_2, window_bounds = array<i64: 2, 1024>}]} {
    %c0 = arith.constant 0 : index
    %c0_0 = arith.constant 0 : index
    %0 = vector.load %arg1[%c0, %c0_0] : memref<2x1024xf32, #tpu.memory_space<vmem>>, vector<2x1024xf32>
    %c0_1 = arith.constant 0 : index
    %c0_2 = arith.constant 0 : index
    %1 = vector.load %arg2[%c0_1, %c0_2] : memref<2x1024xf32, #tpu.memory_space<vmem>>, vector<2x1024xf32>
    %2 = arith.addf %0, %1 : vector<2x1024xf32>
    %c0_3 = arith.constant 0 : index
    %c0_4 = arith.constant 0 : index
    %3 = vector.load %arg3[%c0_3, %c0_4] : memref<2x1024xf32, #tpu.memory_space<vmem>>, vector<2x1024xf32>
    tpu.vector_store %arg3[%c0_3, %c0_4], %2 {strides = array<i32>} : memref<2x1024xf32, #tpu.memory_space<vmem>>, vector<2x1024xf32>,
    return
  }
  func.func @transform_0(%arg0: i32) -> (i32, i32) {
    %c0_i32 = arith.constant 0 : i32
    %c0_i32_0 = arith.constant 0 : i32
    return %arg0, %c0_i32 : i32, i32
  }
  func.func @transform_1(%arg0: i32) -> (i32, i32) {
    %c0_i32 = arith.constant 0 : i32
    %c0_i32_0 = arith.constant 0 : i32
    return %arg0, %c0_i32 : i32, i32
  }
  func.func @transform_2(%arg0: i32) -> (i32, i32) {
    %c0_i32 = arith.constant 0 : i32
    %c0_i32_0 = arith.constant 0 : i32
    return %arg0, %c0_i32 : i32, i32
  }
}

</mosaic_0001>

<bundles_post_ra>
// kernel: residual_add.1
= control target key start
LH: loop header
LB: loop body
LE: loop exit
PB: predicated region body
PF: predicated region fallthrough
CT: control target
= control target key end

     0   :  { %s56_s0 = inlined_call_operand.vmem [shape: f32[2,1024], index: 0, kind: input, shape index: {}, may-alias: {0,2}]   ;;  %s57_s1 = inlined_call_operand.vmem [shape: f32[2,1024], index: 1, kind: input, shape index: {}]   ;;  %s58_s2 = inlined_call_operand.vmem [shape: f32[2,1024], index: 2, kind: output, shape index: {}, may-alias: {0,2}]  }
   0x1   :  { %v11_v0 = vld [vmem:[%s56_s0] sm:$0xff]  ;;  %v12_v2 = vld [vmem:[%s56_s0 + $0x8] sm:$0xff] }
   0x2   :  { %v13_v1 = vld [vmem:[%s57_s1] sm:$0xff]  ;;  %v14_v4 = vld [vmem:[%s57_s1 + $0x8] sm:$0xff] }
   0x3   :  { %v15_v3 = vadd.f32 %v13_v1, %v11_v0  ;;  %v16_v5 = vadd.f32 %v14_v4, %v12_v2 }
   0x5   :  { %17 = vst [vmem:[%s58_s2] sm:$0xff] %v15_v3  ;;  %18 = vst [vmem:[%s58_s2 + $0x8] sm:$0xff] %v16_v5 }

</bundles_post_ra>
